<compile_context>
chip_gen: v6e
topology: v6e:2x2x1
jax: 0.10.0
libtpu: 0.0.40
codegen_flags: <defaults>
</compile_context>

<pallas_src>
import jax
import jax.numpy as jnp
from jax.experimental import pallas as pl
from jax.experimental.pallas import tpu as pltpu

_LANE = 128
_SUBLANE = 8


def _round_up(x, m):
    return (x + m - 1) // m * m


def _cls_head_kernel(x_ref, w1_ref, b1_ref, w2_ref, b2_ref, o_ref):
    # x_ref : [TB, D]            token-0 activations for this batch tile
    # w1_ref: [D, inner_pad]     resident (single-buffered) across the grid
    # b1_ref: [1, inner_pad]     f32
    # w2_ref: [inner_pad, C]
    # b2_ref: [1, C]             f32
    # o_ref : [TB, C]            unpadded logits tile
    x = x_ref[...]
    # Dropout is identity in eval mode.
    h = jnp.dot(x.astype(w1_ref.dtype), w1_ref[...],
                preferred_element_type=jnp.float32) + b1_ref[...]
    h = jnp.tanh(h)
    y = jnp.dot(h.astype(w2_ref.dtype), w2_ref[...],
                preferred_element_type=jnp.float32) + b2_ref[...]
    o_ref[...] = y.astype(o_ref.dtype)


def _vmem_budget_bytes():
    """Generation-aware VMEM budget: large tiles on v5e/v6e (128 MiB physical
    VMEM), conservative on v7x (64 MiB physical / 32 MiB default scoped)."""
    try:
        cap = pltpu.get_tpu_info().vmem_capacity_bytes
    except Exception:  # info query unavailable -> assume the smallest (v7x)
        cap = 64 * 1024 * 1024
    budget = min(int(cap * 0.75), 96 * 1024 * 1024)
    limit = min(cap - 8 * 1024 * 1024, budget + 16 * 1024 * 1024)
    limit = max(limit, 32 * 1024 * 1024)
    return budget, limit


def _pick_batch_tile(B, D, inner_pad, c_out, x_dsize, w_dsize, budget_bytes):
    """Largest batch tile such that single-buffered resident weights +
    double-buffered x/out tiles + the f32 h intermediate fit the budget."""
    resident = w_dsize * (D * inner_pad + inner_pad * c_out) + 4 * (inner_pad + c_out)

    def tile_bytes(t):
        return (2 * t * D * x_dsize        # x tile, double-buffered
                + 2 * t * c_out * 4        # out tile, double-buffered
                + 2 * t * inner_pad * 4)   # h intermediate + matmul/tanh temps

    b8 = max(_SUBLANE, _round_up(B, _SUBLANE))
    tb = min(b8, 2048)
    while tb > _SUBLANE and resident + tile_bytes(tb) > budget_bytes:
        tb //= 2
    if B <= _SUBLANE:
        return B                     # block 2nd-minor dim == full array dim
    if tb >= 256:
        tb = (tb // 256) * 256       # MXU M-granularity on v6e/v7x
    else:
        tb = max(_SUBLANE, (tb // _SUBLANE) * _SUBLANE)
    return min(tb, b8)


def classification_head(features, w1, b1, w2, b2, *, use_bf16=False):
    """features: [B, S, D]. Returns logits [B, num_classes] (eval-mode head)."""
    B, S, D = features.shape
    inner = w1.shape[1]
    num_classes = w2.shape[1]

    # ---- one-time weight prep (would happen at model-load time) ----
    # Pad only the hidden (inner) dim to lane width: lane-dense h, aligned MXU
    # N dim for dot #1 and K dim for dot #2. Zero padding is exact: padded h
    # columns are tanh(0 + 0) = 0 and multiply all-zero w2 rows.
    inner_pad = _round_up(inner, _LANE)
    w_dtype = jnp.bfloat16 if use_bf16 else w1.dtype
    w1p = jnp.zeros((D, inner_pad), w_dtype).at[:, :inner].set(w1.astype(w_dtype))
    w2p = jnp.zeros((inner_pad, num_classes), w_dtype).at[:inner, :].set(w2.astype(w_dtype))
    b1p = jnp.zeros((1, inner_pad), jnp.float32).at[0, :inner].set(b1.astype(jnp.float32))
    b2p = b2.astype(jnp.float32).reshape(1, num_classes)

    x_dsize = jnp.dtype(features.dtype).itemsize
    w_dsize = jnp.dtype(w_dtype).itemsize
    budget, vmem_limit = _vmem_budget_bytes()
    tb = _pick_batch_tile(B, D, inner_pad, num_classes, x_dsize, w_dsize, budget)
    grid = (pl.cdiv(B, tb),)

    # Small-D fallback: a token-0 row of < 512 B makes the in-kernel strided
    # gather DMA latency-bound; a contiguous wrapper slice restores full-burst
    # reads. For production D (>= 128 f32) the gather stays fused in-kernel.
    fuse_gather = D * x_dsize >= 512
    if fuse_gather:
        x_in = features
        x_spec = pl.BlockSpec((tb, pl.Squeezed(), D), lambda i: (i, 0, 0))
    else:
        x_in = features[:, 0, :]
        x_spec = pl.BlockSpec((tb, D), lambda i: (i, 0))

    resident_map = lambda i: (0, 0)  # weights/biases: same block every step

    def run(single_buffer_weights):
        w_mode = pl.Buffered(1) if single_buffer_weights else None
        return pl.pallas_call(
            _cls_head_kernel,
            out_shape=jax.ShapeDtypeStruct((B, num_classes), features.dtype),
            grid=grid,
            in_specs=[
                x_spec,
                pl.BlockSpec((D, inner_pad), resident_map, pipeline_mode=w_mode),
                pl.BlockSpec((1, inner_pad), resident_map, pipeline_mode=w_mode),
                pl.BlockSpec((inner_pad, num_classes), resident_map, pipeline_mode=w_mode),
                pl.BlockSpec((1, num_classes), resident_map, pipeline_mode=w_mode),
            ],
            # Unpadded output: block last dim == array last dim (legal), no
            # wrapper slice, 16x less logits writeback than 128-padding.
            out_specs=pl.BlockSpec((tb, num_classes), lambda i: (i, 0)),
            compiler_params=pltpu.CompilerParams(
                # Batch tiles are independent.
                # TODO(synk): on v7x confirm both TCs are active in the profile;
                # if one is idle switch to pltpu.CORE_PARALLEL / pl.core_map.
                dimension_semantics=("parallel",),
                vmem_limit_bytes=vmem_limit,
            ),
        )(x_in, w1p, b1p, w2p, b2p)

    try:
        return run(single_buffer_weights=True)
    except Exception:
        # TODO(synk): pl.Buffered(1) not accepted by this jax version; fall
        # back to default double-buffered weights (only costs 2x resident VMEM).
        return run(single_buffer_weights=False)


def reference(features, w1, b1, w2, b2):
    x = features[:, 0, :]
    h = jnp.tanh(x @ w1 + b1)
    return h @ w2 + b2


if __name__ == "__main__":
    # Small shapes consistent with the module.
    B, S, input_dim = 2, 8, 32
    inner_dim, num_classes = 32, 8
    # pooler_dropout -> identity at inference.
    # TODO(synk): training-mode dropout (pltpu.prng_*) not implemented; eval semantics only.

    key = jax.random.PRNGKey(0)
    k_feat, k_w1, k_b1, k_w2, k_b2 = jax.random.split(key, 5)

    features = jax.random.normal(k_feat, (B, S, input_dim), dtype=jnp.float32)
    w1 = jax.random.normal(k_w1, (input_dim, inner_dim), dtype=jnp.float32) * (1.0 / jnp.sqrt(input_dim))
    b1 = jax.random.normal(k_b1, (inner_dim,), dtype=jnp.float32) * 0.01
    w2 = jax.random.normal(k_w2, (inner_dim, num_classes), dtype=jnp.float32) * (1.0 / jnp.sqrt(inner_dim))
    b2 = jax.random.normal(k_b2, (num_classes,), dtype=jnp.float32) * 0.01

    logits = classification_head(features, w1, b1, w2, b2)
    jax.block_until_ready(logits)

    ref = reference(features, w1, b1, w2, b2)
    assert logits.shape == (B, num_classes)
    assert jnp.allclose(logits, ref, atol=1e-5, rtol=1e-5), "mismatch vs reference"

    print("KERNEL_OK")
</pallas_src>

<mosaic_0001>
module attributes {stable_mosaic.version = 11 : i64} {
  func.func @_cls_head_kernel(%arg0: i32, %arg1: memref<2x32xf32, #tpu.memory_space<vmem>>, %arg2: memref<32x128xf32, #tpu.memory_space<vmem>>, %arg3: memref<1x128xf32, #tpu.memory_space<vmem>>, %arg4: memref<128x8xf32, #tpu.memory_space<vmem>>, %arg5: memref<1x8xf32, #tpu.memory_space<vmem>>, %arg6: memref<2x8xf32, #tpu.memory_space<vmem>>) attributes {dimension_semantics = [#tpu.dimension_semantics<parallel>], iteration_bounds = array<i64: 1>, scalar_prefetch = 0 : i64, scratch_operands = 0 : i64, tpu.core_type = #tpu.core_type<tc>, window_params = [{transform_indices = @transform_0, window_bounds = array<i64: 2, 32>}, {pipeline_mode = #tpu.pipeline_mode<synchronous>, transform_indices = @transform_1, window_bounds = array<i64: 32, 128>}, {pipeline_mode = #tpu.pipeline_mode<synchronous>, transform_indices = @transform_2, window_bounds = array<i64: 1, 128>}, {pipeline_mode = #tpu.pipeline_mode<synchronous>, transform_indices = @transform_3, window_bounds = array<i64: 128, 8>}, {pipeline_mode = #tpu.pipeline_mode<synchronous>, transform_indices = @transform_4, window_bounds = array<i64: 1, 8>}, {transform_indices = @transform_5, window_bounds = array<i64: 2, 8>}]} {
    %c0 = arith.constant 0 : index
    %c0_0 = arith.constant 0 : index
    %0 = vector.load %arg1[%c0, %c0_0] : memref<2x32xf32, #tpu.memory_space<vmem>>, vector<2x32xf32>
    %c0_1 = arith.constant 0 : index
    %c0_2 = arith.constant 0 : index
    %1 = vector.load %arg2[%c0_1, %c0_2] : memref<32x128xf32, #tpu.memory_space<vmem>>, vector<32x128xf32>
    %cst = arith.constant dense<0.000000e+00> : vector<2x128xf32>
    %2 = tpu.matmul %0, %1, %cst {dimension_numbers = #tpu.dot_dimension_numbers<[1], [0], [0], [1], [0, 0, 1, 1], [], []>} : vector<2x32xf32>, vector<32x128xf32>, vector<2x128xf32> -> vector<2x128xf32>
    %c0_3 = arith.constant 0 : index
    %c0_4 = arith.constant 0 : index
    %3 = vector.load %arg3[%c0_3, %c0_4] : memref<1x128xf32, #tpu.memory_space<vmem>>, vector<1x128xf32>
    %4 = vector.broadcast %3 : vector<1x128xf32> to vector<2x128xf32>
    %5 = arith.addf %2, %4 : vector<2x128xf32>
    %6 = math.tanh %5 : vector<2x128xf32>
    %c0_5 = arith.constant 0 : index
    %c0_6 = arith.constant 0 : index
    %7 = vector.load %arg4[%c0_5, %c0_6] : memref<128x8xf32, #tpu.memory_space<vmem>>, vector<128x8xf32>
    %cst_7 = arith.constant dense<0.000000e+00> : vector<2x8xf32>
    %8 = tpu.matmul %6, %7, %cst_7 {dimension_numbers = #tpu.dot_dimension_numbers<[1], [0], [0], [1], [0, 0, 1, 1], [], []>} : vector<2x128xf32>, vector<128x8xf32>, vector<2x8xf32> -> vector<2x8xf32>
    %c0_8 = arith.constant 0 : index
    %c0_9 = arith.constant 0 : index
    %9 = vector.load %arg5[%c0_8, %c0_9] : memref<1x8xf32, #tpu.memory_space<vmem>>, vector<1x8xf32>
    %10 = vector.broadcast %9 : vector<1x8xf32> to vector<2x8xf32>
    %11 = arith.addf %8, %10 : vector<2x8xf32>
    %c0_10 = arith.constant 0 : index
    %c0_11 = arith.constant 0 : index
    %12 = vector.load %arg6[%c0_10, %c0_11] : memref<2x8xf32, #tpu.memory_space<vmem>>, vector<2x8xf32>
    tpu.vector_store %arg6[%c0_10, %c0_11], %11 {strides = array<i32>} : memref<2x8xf32, #tpu.memory_space<vmem>>, vector<2x8xf32>,
    return
  }
  func.func @transform_0(%arg0: i32) -> (i32, i32) {
    %c0_i32 = arith.constant 0 : i32
    %c0_i32_0 = arith.constant 0 : i32
    return %arg0, %c0_i32 : i32, i32
  }
  func.func @transform_1(%arg0: i32) -> (i32, i32) {
    %c0_i32 = arith.constant 0 : i32
    %c0_i32_0 = arith.constant 0 : i32
    %c0_i32_1 = arith.constant 0 : i32
    return %c0_i32, %c0_i32_0 : i32, i32
  }
  func.func @transform_2(%arg0: i32) -> (i32, i32) {
    %c0_i32 = arith.constant 0 : i32
    %c0_i32_0 = arith.constant 0 : i32
    %c0_i32_1 = arith.constant 0 : i32
    return %c0_i32, %c0_i32_0 : i32, i32
  }
  func.func @transform_3(%arg0: i32) -> (i32, i32) {
    %c0_i32 = arith.constant 0 : i32
    %c0_i32_0 = arith.constant 0 : i32
    %c0_i32_1 = arith.constant 0 : i32
    return %c0_i32, %c0_i32_0 : i32, i32
  }
  func.func @transform_4(%arg0: i32) -> (i32, i32) {
    %c0_i32 = arith.constant 0 : i32
    %c0_i32_0 = arith.constant 0 : i32
    %c0_i32_1 = arith.constant 0 : i32
    return %c0_i32, %c0_i32_0 : i32, i32
  }
  func.func @transform_5(%arg0: i32) -> (i32, i32) {
    %c0_i32 = arith.constant 0 : i32
    %c0_i32_0 = arith.constant 0 : i32
    return %arg0, %c0_i32 : i32, i32
  }
}

module attributes {stable_mosaic.version = 11 : i64} {
  func.func @_cls_head_kernel(%arg0: i32, %arg1: memref<2x32xf32, #tpu.memory_space<vmem>>, %arg2: memref<32x128xf32, #tpu.memory_space<vmem>>, %arg3: memref<1x128xf32, #tpu.memory_space<vmem>>, %arg4: memref<128x8xf32, #tpu.memory_space<vmem>>, %arg5: memref<1x8xf32, #tpu.memory_space<vmem>>, %arg6: memref<2x8xf32, #tpu.memory_space<vmem>>) attributes {dimension_semantics = [#tpu.dimension_semantics<parallel>], iteration_bounds = array<i64: 1>, scalar_prefetch = 0 : i64, scratch_operands = 0 : i64, tpu.core_type = #tpu.core_type<tc>, window_params = [{transform_indices = @transform_0, window_bounds = array<i64: 2, 32>}, {pipeline_mode = #tpu.pipeline_mode<synchronous>, transform_indices = @transform_1, window_bounds = array<i64: 32, 128>}, {pipeline_mode = #tpu.pipeline_mode<synchronous>, transform_indices = @transform_2, window_bounds = array<i64: 1, 128>}, {pipeline_mode = #tpu.pipeline_mode<synchronous>, transform_indices = @transform_3, window_bounds = array<i64: 128, 8>}, {pipeline_mode = #tpu.pipeline_mode<synchronous>, transform_indices = @transform_4, window_bounds = array<i64: 1, 8>}, {transform_indices = @transform_5, window_bounds = array<i64: 2, 8>}]} {
    %c0 = arith.constant 0 : index
    %c0_0 = arith.constant 0 : index
    %0 = vector.load %arg1[%c0, %c0_0] : memref<2x32xf32, #tpu.memory_space<vmem>>, vector<2x32xf32>
    %c0_1 = arith.constant 0 : index
    %c0_2 = arith.constant 0 : index
    %1 = vector.load %arg2[%c0_1, %c0_2] : memref<32x128xf32, #tpu.memory_space<vmem>>, vector<32x128xf32>
    %cst = arith.constant dense<0.000000e+00> : vector<2x128xf32>
    %2 = tpu.matmul %0, %1, %cst {dimension_numbers = #tpu.dot_dimension_numbers<[1], [0], [0], [1], [0, 0, 1, 1], [], []>} : vector<2x32xf32>, vector<32x128xf32>, vector<2x128xf32> -> vector<2x128xf32>
    %c0_3 = arith.constant 0 : index
    %c0_4 = arith.constant 0 : index
    %3 = vector.load %arg3[%c0_3, %c0_4] : memref<1x128xf32, #tpu.memory_space<vmem>>, vector<1x128xf32>
    %4 = vector.broadcast %3 : vector<1x128xf32> to vector<2x128xf32>
    %5 = arith.addf %2, %4 : vector<2x128xf32>
    %6 = math.tanh %5 : vector<2x128xf32>
    %c0_5 = arith.constant 0 : index
    %c0_6 = arith.constant 0 : index
    %7 = vector.load %arg4[%c0_5, %c0_6] : memref<128x8xf32, #tpu.memory_space<vmem>>, vector<128x8xf32>
    %cst_7 = arith.constant dense<0.000000e+00> : vector<2x8xf32>
    %8 = tpu.matmul %6, %7, %cst_7 {dimension_numbers = #tpu.dot_dimension_numbers<[1], [0], [0], [1], [0, 0, 1, 1], [], []>} : vector<2x128xf32>, vector<128x8xf32>, vector<2x8xf32> -> vector<2x8xf32>
    %c0_8 = arith.constant 0 : index
    %c0_9 = arith.constant 0 : index
    %9 = vector.load %arg5[%c0_8, %c0_9] : memref<1x8xf32, #tpu.memory_space<vmem>>, vector<1x8xf32>
    %10 = vector.broadcast %9 : vector<1x8xf32> to vector<2x8xf32>
    %11 = arith.addf %8, %10 : vector<2x8xf32>
    %c0_10 = arith.constant 0 : index
    %c0_11 = arith.constant 0 : index
    %12 = vector.load %arg6[%c0_10, %c0_11] : memref<2x8xf32, #tpu.memory_space<vmem>>, vector<2x8xf32>
    tpu.vector_store %arg6[%c0_10, %c0_11], %11 {strides = array<i32>} : memref<2x8xf32, #tpu.memory_space<vmem>>, vector<2x8xf32>,
    return
  }
  func.func @transform_0(%arg0: i32) -> (i32, i32) {
    %c0_i32 = arith.constant 0 : i32
    %c0_i32_0 = arith.constant 0 : i32
    return %arg0, %c0_i32 : i32, i32
  }
  func.func @transform_1(%arg0: i32) -> (i32, i32) {
    %c0_i32 = arith.constant 0 : i32
    %c0_i32_0 = arith.constant 0 : i32
    %c0_i32_1 = arith.constant 0 : i32
    return %c0_i32, %c0_i32_0 : i32, i32
  }
  func.func @transform_2(%arg0: i32) -> (i32, i32) {
    %c0_i32 = arith.constant 0 : i32
    %c0_i32_0 = arith.constant 0 : i32
    %c0_i32_1 = arith.constant 0 : i32
    return %c0_i32, %c0_i32_0 : i32, i32
  }
  func.func @transform_3(%arg0: i32) -> (i32, i32) {
    %c0_i32 = arith.constant 0 : i32
    %c0_i32_0 = arith.constant 0 : i32
    %c0_i32_1 = arith.constant 0 : i32
    return %c0_i32, %c0_i32_0 : i32, i32
  }
  func.func @transform_4(%arg0: i32) -> (i32, i32) {
    %c0_i32 = arith.constant 0 : i32
    %c0_i32_0 = arith.constant 0 : i32
    %c0_i32_1 = arith.constant 0 : i32
    return %c0_i32, %c0_i32_0 : i32, i32
  }
  func.func @transform_5(%arg0: i32) -> (i32, i32) {
    %c0_i32 = arith.constant 0 : i32
    %c0_i32_0 = arith.constant 0 : i32
    return %arg0, %c0_i32 : i32, i32
  }
}

</mosaic_0001>

<bundles_post_ra>
// kernel: tpu_custom_call.1
= control target key start
LH: loop header
LB: loop body
LE: loop exit
PB: predicated region body
PF: predicated region fallthrough
CT: control target
= control target key end

     0   :  { %v315_v1 = vmov 0.0   ;;  %vm316_vm0 = vmmov 0   ;;  %s444_s0 = inlined_call_operand.vmem [shape: f32[2,32], index: 0, kind: input, shape index: {}]   ;;  %s445_s1 = inlined_call_operand.vmem [shape: f32[32,128], index: 1, kind: input, shape index: {}]   ;;  %s446_s2 = inlined_call_operand.vmem [shape: f32[1,128], index: 2, kind: input, shape index: {}]   ;;  %s447_s3 = inlined_call_operand.vmem [shape: f32[128,8], index: 3, kind: input, shape index: {}]   ;;  %s448_s4 = inlined_call_operand.vmem [shape: f32[1,8], index: 4, kind: input, shape index: {}]   ;;  %s449_s5 = inlined_call_operand.hbm [shape: f32[2,8], index: 5, kind: output, shape index: {}]  }
   0x1   :  { %v25_v0 = vld [vmem:[%s445_s1 + $0x18] sm:$0xff]  ;;  %242 = vmatprep.subr.mxu0 %v315_v1  ;;  %v24_v2 = vld [vmem:[%s445_s1 + $0x10] sm:$0xff]  ;;  %250 = vmatprep.mubr.msk.f32.mxu0 %vm316_vm0, %v315_v1  ;;  %v23_v5 = vld [vmem:[%s445_s1 + $0x8] sm:$0xff] }
   0x2   :  { %v123_v3 = vld [vmem:[%s447_s3 + $0x78] sm:$0xff]  ;;  %243 = vmatpush3.msra.mxu0 %v25_v0  ;;  %253 = vmatprep.subr.mxu1 %v315_v1  ;;  %v122_v4 = vld [vmem:[%s447_s3 + $0x70] sm:$0xff]  ;;  %v121_v6 = vld [vmem:[%s447_s3 + $0x68] sm:$0xff] }
   0x3   :  { %244 = vmatprep.subr.mxu0 %v315_v1  ;;  %254 = vmatpush3.msra.mxu1 %v123_v3 }
   0x4   :  { %245 = vmatpush3.msra.mxu0 %v24_v2  ;;  %255 = vmatprep.subr.mxu1 %v315_v1 }
   0x5   :  { %10 = vsyncpa [#allocation3], 0  ;;  %246 = vmatprep.subr.mxu0 %v315_v1  ;;  %v22_v7 = vld [vmem:[%s445_s1] sm:$0xff]  ;;  %256 = vmatpush3.msra.mxu1 %v122_v4  ;;  %vm33_vm1 = vcmask 261120   ;;  %v119_v10 = vld [vmem:[%s447_s3 + $0x58] sm:$0xff]  ;;  %s317_s11 = smov [#allocation2]  }
   0x6   :  { %247 = vmatpush3.msra.mxu0 %v23_v5  ;;  %v21_v8 = vld [vmem:[%s444_s0] sm:$0x3]  ;;  %257 = vmatprep.subr.mxu1 %v315_v1  ;;  %v118_v11 = vld [vmem:[%s447_s3 + $0x50] sm:$0xff]  ;;  %v117_v12 = vld [vmem:[%s447_s3 + $0x48] sm:$0xff]  ;;  %vm201_vm2 = vcmask 58368  }
   0x7   :  { %v120_v9 = vld [vmem:[%s447_s3 + $0x60] sm:$0xff]  ;;  %248 = vmatprep.subr.mxu0 %v315_v1  ;;  %258 = vmatpush3.msra.mxu1 %v121_v6  ;;  %v115_v14 = vld [vmem:[%s447_s3 + $0x38] sm:$0xff]  ;;  %v114_v15 = vld [vmem:[%s447_s3 + $0x30] sm:$0xff] }
   0x8   :  { %249 = vmatpush3.msra.mxu0 %v22_v7  ;;  %259 = vmatprep.subr.mxu1 %v315_v1  ;;  %v116_v13 = vld [vmem:[%s447_s3 + $0x40] sm:$0xff]  ;;  %v113_v16 = vld [vmem:[%s447_s3 + $0x28] sm:$0xff]  ;;  %v111_v18 = vld [vmem:[%s447_s3 + $0x18] sm:$0xff] }
   0x9   :  { %251 = vmatmul.mubr.msk.f32.vlgmr.msra.gmra.mxu0 %vm33_vm1, %v21_v8  ;;  %260 = vmatpush3.msra.mxu1 %v120_v9  ;;  %v112_v17 = vld [vmem:[%s447_s3 + $0x20] sm:$0xff]  ;;  %v110_v19 = vld [vmem:[%s447_s3 + $0x10] sm:$0xff]  ;;  %v109_v20 = vld [vmem:[%s447_s3 + $0x8] sm:$0xff] }
   0xa   :  { %261 = vmatprep.subr.mxu1 %v315_v1  ;;  %285 = vmatprep.mubr.msk.f32.mxu1 %vm316_vm0, %v315_v1  ;;  %v108_v21 = vld [vmem:[%s447_s3] sm:$0xff]  ;;  %s209_s3 = sshll.u32 %s317_s11, 4  ;;  %s210_s3 = int_to_ptr.vmem [resolvable:$true] %s209_s3 }
   0xb   :  { %262 = vmatpush3.msra.mxu1 %v119_v10  ;;  %v217_v22 = vld [vmem:[%s446_s2] ss:$0 sm:$0xff]  ;;  %s293_s0 = scalar_lea.vmem %s210_s3, 32  ;;  %p298_p1 = scmp.lt.s32.totalorder %s210_s3, %s210_s3 }
   0xc   :  { %263 = vmatprep.subr.mxu1 %v315_v1  ;;  %v219_v27 = vld [vmem:[%s448_s4] ss:$0 sm:$0xff]  ;;  %p294_p0 = scmp.ne.s32.totalorder %s210_s3, %s293_s0  ;;  %p299_p2 = scmp.lt.s32.totalorder %s293_s0, %s293_s0 }
   0xd   :  { %264 = vmatpush3.msra.mxu1 %v118_v11 }
   0xe   :  { %265 = vmatprep.subr.mxu1 %v315_v1  ;;  %p300_p3 = por %p299_p2, %p298_p1 }
   0xf   :  { %266 = vmatpush3.msra.mxu1 %v117_v12 }
  0x10   :  { %267 = vmatprep.subr.mxu1 %v315_v1  ;;  %p301_p4 = pnand %p300_p3, %p294_p0 }
  0x11   :  { %268 = vmatpush3.msra.mxu1 %v116_v13 }
  0x12   :  { %269 = vmatprep.subr.mxu1 %v315_v1 }
  0x13   :  { %270 = vmatpush3.msra.mxu1 %v115_v14 }
  0x14   :  { %271 = vmatprep.subr.mxu1 %v315_v1 }
  0x15   :  { %272 = vmatpush3.msra.mxu1 %v114_v15 }
  0x16   :  { %273 = vmatprep.subr.mxu1 %v315_v1 }
  0x17   :  { %274 = vmatpush3.msra.mxu1 %v113_v16 }
  0x18   :  { %275 = vmatprep.subr.mxu1 %v315_v1 }
  0x19   :  { %276 = vmatpush3.msra.mxu1 %v112_v17 }
  0x1a   :  { %277 = vmatprep.subr.mxu1 %v315_v1 }
  0x1b   :  { %278 = vmatpush3.msra.mxu1 %v111_v18 }
  0x1c   :  { %279 = vmatprep.subr.mxu1 %v315_v1 }
  0x1d   :  { %280 = vmatpush3.msra.mxu1 %v110_v19 }
  0x1e   :  { %281 = vmatprep.subr.mxu1 %v315_v1 }
  0x1f   :  { %282 = vmatpush3.msra.mxu1 %v109_v20 }
  0x20   :  { %283 = vmatprep.subr.mxu1 %v315_v1 }
  0x21   :  { %284 = vmatpush3.msra.mxu1 %v108_v21 }
  0xc9   :  { %v103_v23 = vpop.f32.mrf.mxu0 }
  0xca   :  { %v104_v24 = vadd.f32 %v217_v22, %v103_v23 }
  0xcb   :  { %v252_v25 = vpop.f32.mrf.mxu0 }
  0xcc   :  { %291 = vtanh.f32 %v104_v24 }
  0xd9   :  { %v292_v26 = vpop.eup %291 }
  0xda   :  { %286 = vmatmul.mubr.f32.vlgmr.msra.gmra.mxu1 %v292_v26 }
 0x19a   :  { %v197_v28 = vpop.f32.mrf.mxu1 }
 0x19b   :  { %v198_v29 = vadd.f32 %v219_v27, %v197_v28 }
 0x19c   :  { %v287_v30 = vpop.f32.mrf.mxu1 }
 0x19d   :  { %202 = vst.msk [vmem:[#allocation2] sm:$0x3] %vm201_vm2, %v198_v29 }
 0x19e   :  { %304 = shalt.err (!%p301_p4)
}
 0x19f   :  { %212 = dma.vmem_to_hbm [thread:$0]  %s210_s3, 32, %s449_s5, [#allocation3]  }
 0x1a0   :  { %313 = dma.done.wait [#allocation3], 32  }
 0x1a1   :  { %314 = vsyncadd [#allocation3], 4294967264 }
 0x1a2   :  { %216 = vsyncpa [#allocation3], 1 }

// kernel: tpu_custom_call.1
= control target key start
LH: loop header
LB: loop body
LE: loop exit
PB: predicated region body
PF: predicated region fallthrough
CT: control target
= control target key end

     0   :  { %v315_v1 = vmov 0.0   ;;  %vm316_vm0 = vmmov 0   ;;  %s444_s0 = inlined_call_operand.vmem [shape: f32[2,32], index: 0, kind: input, shape index: {}]   ;;  %s445_s1 = inlined_call_operand.vmem [shape: f32[32,128], index: 1, kind: input, shape index: {}]   ;;  %s446_s2 = inlined_call_operand.vmem [shape: f32[1,128], index: 2, kind: input, shape index: {}]   ;;  %s447_s3 = inlined_call_operand.vmem [shape: f32[128,8], index: 3, kind: input, shape index: {}]   ;;  %s448_s4 = inlined_call_operand.vmem [shape: f32[1,8], index: 4, kind: input, shape index: {}]   ;;  %s449_s5 = inlined_call_operand.hbm [shape: f32[2,8], index: 5, kind: output, shape index: {}]  }
   0x1   :  { %v25_v0 = vld [vmem:[%s445_s1 + $0x18] sm:$0xff]  ;;  %242 = vmatprep.subr.mxu0 %v315_v1  ;;  %v24_v2 = vld [vmem:[%s445_s1 + $0x10] sm:$0xff]  ;;  %250 = vmatprep.mubr.msk.f32.mxu0 %vm316_vm0, %v315_v1  ;;  %v23_v5 = vld [vmem:[%s445_s1 + $0x8] sm:$0xff] }
   0x2   :  { %v123_v3 = vld [vmem:[%s447_s3 + $0x78] sm:$0xff]  ;;  %243 = vmatpush3.msra.mxu0 %v25_v0  ;;  %253 = vmatprep.subr.mxu1 %v315_v1  ;;  %v122_v4 = vld [vmem:[%s447_s3 + $0x70] sm:$0xff]  ;;  %v121_v6 = vld [vmem:[%s447_s3 + $0x68] sm:$0xff] }
   0x3   :  { %244 = vmatprep.subr.mxu0 %v315_v1  ;;  %254 = vmatpush3.msra.mxu1 %v123_v3 }
   0x4   :  { %245 = vmatpush3.msra.mxu0 %v24_v2  ;;  %255 = vmatprep.subr.mxu1 %v315_v1 }
   0x5   :  { %10 = vsyncpa [#allocation3], 0  ;;  %246 = vmatprep.subr.mxu0 %v315_v1  ;;  %v22_v7 = vld [vmem:[%s445_s1] sm:$0xff]  ;;  %256 = vmatpush3.msra.mxu1 %v122_v4  ;;  %vm33_vm1 = vcmask 261120   ;;  %v119_v10 = vld [vmem:[%s447_s3 + $0x58] sm:$0xff]  ;;  %s317_s11 = smov [#allocation2]  }
   0x6   :  { %247 = vmatpush3.msra.mxu0 %v23_v5  ;;  %v21_v8 = vld [vmem:[%s444_s0] sm:$0x3]  ;;  %257 = vmatprep.subr.mxu1 %v315_v1  ;;  %v118_v11 = vld [vmem:[%s447_s3 + $0x50] sm:$0xff]  ;;  %v117_v12 = vld [vmem:[%s447_s3 + $0x48] sm:$0xff]  ;;  %vm201_vm2 = vcmask 58368  }
   0x7   :  { %v120_v9 = vld [vmem:[%s447_s3 + $0x60] sm:$0xff]  ;;  %248 = vmatprep.subr.mxu0 %v315_v1  ;;  %258 = vmatpush3.msra.mxu1 %v121_v6  ;;  %v115_v14 = vld [vmem:[%s447_s3 + $0x38] sm:$0xff]  ;;  %v114_v15 = vld [vmem:[%s447_s3 + $0x30] sm:$0xff] }
   0x8   :  { %249 = vmatpush3.msra.mxu0 %v22_v7  ;;  %259 = vmatprep.subr.mxu1 %v315_v1  ;;  %v116_v13 = vld [vmem:[%s447_s3 + $0x40] sm:$0xff]  ;;  %v113_v16 = vld [vmem:[%s447_s3 + $0x28] sm:$0xff]  ;;  %v111_v18 = vld [vmem:[%s447_s3 + $0x18] sm:$0xff] }
   0x9   :  { %251 = vmatmul.mubr.msk.f32.vlgmr.msra.gmra.mxu0 %vm33_vm1, %v21_v8  ;;  %260 = vmatpush3.msra.mxu1 %v120_v9  ;;  %v112_v17 = vld [vmem:[%s447_s3 + $0x20] sm:$0xff]  ;;  %v110_v19 = vld [vmem:[%s447_s3 + $0x10] sm:$0xff]  ;;  %v109_v20 = vld [vmem:[%s447_s3 + $0x8] sm:$0xff] }
   0xa   :  { %261 = vmatprep.subr.mxu1 %v315_v1  ;;  %285 = vmatprep.mubr.msk.f32.mxu1 %vm316_vm0, %v315_v1  ;;  %v108_v21 = vld [vmem:[%s447_s3] sm:$0xff]  ;;  %s209_s3 = sshll.u32 %s317_s11, 4  ;;  %s210_s3 = int_to_ptr.vmem [resolvable:$true] %s209_s3 }
   0xb   :  { %262 = vmatpush3.msra.mxu1 %v119_v10  ;;  %v217_v22 = vld [vmem:[%s446_s2] ss:$0 sm:$0xff]  ;;  %s293_s0 = scalar_lea.vmem %s210_s3, 32  ;;  %p298_p1 = scmp.lt.s32.totalorder %s210_s3, %s210_s3 }
   0xc   :  { %263 = vmatprep.subr.mxu1 %v315_v1  ;;  %v219_v27 = vld [vmem:[%s448_s4] ss:$0 sm:$0xff]  ;;  %p294_p0 = scmp.ne.s32.totalorder %s210_s3, %s293_s0  ;;  %p299_p2 = scmp.lt.s32.totalorder %s293_s0, %s293_s0 }
   0xd   :  { %264 = vmatpush3.msra.mxu1 %v118_v11 }
   0xe   :  { %265 = vmatprep.subr.mxu1 %v315_v1  ;;  %p300_p3 = por %p299_p2, %p298_p1 }
   0xf   :  { %266 = vmatpush3.msra.mxu1 %v117_v12 }
  0x10   :  { %267 = vmatprep.subr.mxu1 %v315_v1  ;;  %p301_p4 = pnand %p300_p3, %p294_p0 }
  0x11   :  { %268 = vmatpush3.msra.mxu1 %v116_v13 }
  0x12   :  { %269 = vmatprep.subr.mxu1 %v315_v1 }
  0x13   :  { %270 = vmatpush3.msra.mxu1 %v115_v14 }
  0x14   :  { %271 = vmatprep.subr.mxu1 %v315_v1 }
  0x15   :  { %272 = vmatpush3.msra.mxu1 %v114_v15 }
  0x16   :  { %273 = vmatprep.subr.mxu1 %v315_v1 }
  0x17   :  { %274 = vmatpush3.msra.mxu1 %v113_v16 }
  0x18   :  { %275 = vmatprep.subr.mxu1 %v315_v1 }
  0x19   :  { %276 = vmatpush3.msra.mxu1 %v112_v17 }
  0x1a   :  { %277 = vmatprep.subr.mxu1 %v315_v1 }
  0x1b   :  { %278 = vmatpush3.msra.mxu1 %v111_v18 }
  0x1c   :  { %279 = vmatprep.subr.mxu1 %v315_v1 }
  0x1d   :  { %280 = vmatpush3.msra.mxu1 %v110_v19 }
  0x1e   :  { %281 = vmatprep.subr.mxu1 %v315_v1 }
  0x1f   :  { %282 = vmatpush3.msra.mxu1 %v109_v20 }
  0x20   :  { %283 = vmatprep.subr.mxu1 %v315_v1 }
  0x21   :  { %284 = vmatpush3.msra.mxu1 %v108_v21 }
  0xc9   :  { %v103_v23 = vpop.f32.mrf.mxu0 }
  0xca   :  { %v104_v24 = vadd.f32 %v217_v22, %v103_v23 }
  0xcb   :  { %v252_v25 = vpop.f32.mrf.mxu0 }
  0xcc   :  { %291 = vtanh.f32 %v104_v24 }
  0xd9   :  { %v292_v26 = vpop.eup %291 }
  0xda   :  { %286 = vmatmul.mubr.f32.vlgmr.msra.gmra.mxu1 %v292_v26 }
 0x19a   :  { %v197_v28 = vpop.f32.mrf.mxu1 }
 0x19b   :  { %v198_v29 = vadd.f32 %v219_v27, %v197_v28 }
 0x19c   :  { %v287_v30 = vpop.f32.mrf.mxu1 }
 0x19d   :  { %202 = vst.msk [vmem:[#allocation2] sm:$0x3] %vm201_vm2, %v198_v29 }
 0x19e   :  { %304 = shalt.err (!%p301_p4)
}
 0x19f   :  { %212 = dma.vmem_to_hbm [thread:$0]  %s210_s3, 32, %s449_s5, [#allocation3]  }
 0x1a0   :  { %313 = dma.done.wait [#allocation3], 32  }
 0x1a1   :  { %314 = vsyncadd [#allocation3], 4294967264 }
 0x1a2   :  { %216 = vsyncpa [#allocation3], 1 }

</bundles_post_ra>
